<compile_context>
chip_gen: v7x
topology: tpu7x:2x2x1
jax: 0.10.0
libtpu: 0.0.40
codegen_flags: <defaults>
</compile_context>

<pallas_src>
import functools

import jax
import jax.numpy as jnp
from jax.experimental import pallas as pl
from jax.experimental.pallas import tpu as pltpu


_WEIGHT_RESIDENT_LIMIT = 8 << 20       # split E once the resident weight exceeds this
_SINGLE_BUFFER_WEIGHT_BYTES = 1 << 20  # use pl.Buffered(1) for weight/bias above this
_K_SPLIT_THRESHOLD = 4096              # split-K only when K alone is this large


def _round_up(x, m):
    return ((x + m - 1) // m) * m


def _vmem_capacity_bytes():
    """Physical VMEM per TensorCore; conservative 64 MiB (v7x) if unknown."""
    try:
        info = pltpu.get_tpu_info()
        for attr in ("vmem_capacity_bytes", "vmem_bytes", "vmem_size_bytes"):
            val = getattr(info, attr, None)
            if val:
                return int(val)
    except Exception:
        pass
    return 64 << 20


def _proj_kernel(x_ref, w_ref, b_ref, o_ref):
    """o = x @ w + b, f32 accumulation on the MXU (single K block)."""
    acc = jnp.dot(x_ref[...], w_ref[...], preferred_element_type=jnp.float32)
    o_ref[...] = (acc + b_ref[...].astype(jnp.float32)).astype(o_ref.dtype)


def _proj_splitk_inplace_kernel(x_ref, w_ref, b_ref, o_ref):
    """Split-K with f32 output: accumulate straight into the resident output block."""
    @pl.when(pl.program_id(2) == 0)
    def _():
        o_ref[...] = jnp.broadcast_to(b_ref[...], o_ref.shape).astype(o_ref.dtype)

    o_ref[...] += jnp.dot(x_ref[...], w_ref[...], preferred_element_type=jnp.float32)


def _proj_splitk_scratch_kernel(x_ref, w_ref, b_ref, o_ref, acc_ref):
    """Split-K with a narrow output dtype: f32 VMEM accumulator, finalize on last k."""
    k = pl.program_id(2)

    @pl.when(k == 0)
    def _():
        acc_ref[...] = jnp.zeros_like(acc_ref)

    acc_ref[...] += jnp.dot(x_ref[...], w_ref[...], preferred_element_type=jnp.float32)

    @pl.when(k == pl.num_programs(2) - 1)
    def _():
        o_ref[...] = (acc_ref[...] + b_ref[...].astype(jnp.float32)).astype(o_ref.dtype)


def patch_embedding(x, weight, bias, *, patch_size, tile_m=None,
                    use_bf16_operands=True, out_dtype=None):
    """Forward pass of PatchEmbedding.

    Args:
      x:      (B, C, H, W) NCHW input (as in the PyTorch module).
      weight: (E, C, ph, pw) Conv2d weight.
      bias:   (E,) Conv2d bias.
      patch_size: (ph, pw), equal to the conv stride.
      tile_m: override for the M tile (auto-sized from VMEM when None).
      use_bf16_operands: run the matmul with bf16 operands (f32 accumulation);
        set False for strict f32 parity.
      out_dtype: output dtype (defaults to x.dtype); pass bf16 for bf16 consumers.

    Returns:
      (B, num_patches, E).
    """
    ph, pw = patch_size
    B, C, H, W = x.shape
    E = weight.shape[0]
    out_dtype = jnp.dtype(out_dtype if out_dtype is not None else x.dtype)

    # PyTorch Conv2d (no padding) floors the spatial dims: crop any remainder.
    if H % ph or W % pw:
        H, W = (H // ph) * ph, (W // pw) * pw
        x = x[:, :, :H, :W]

    hP, wP = H // ph, W // pw
    nP = hP * wP
    K = C * ph * pw
    M = B * nP

    operand_dtype = jnp.dtype(jnp.bfloat16) if use_bf16_operands else jnp.dtype(x.dtype)
    in_bytes = operand_dtype.itemsize
    out_bytes = out_dtype.itemsize
    sublane = 16 if in_bytes == 2 else 8

    # ---- patch gather (im2col) in XLA; cast fused into the transpose so the one
    #      pre-kernel HBM round trip is written at operand precision, no pads. ----
    # (B, C, hP, ph, wP, pw) -> (B, hP, wP, C, ph, pw) -> (M, K)
    xp = x.astype(operand_dtype).reshape(B, C, hP, ph, wP, pw)
    xp = jnp.transpose(xp, (0, 2, 4, 1, 3, 5)).reshape(M, K)

    # Conv weight (E, C, ph, pw) -> (K, E); bias -> (1, E), kept in f32.
    w2d = weight.reshape(E, K).T.astype(operand_dtype)
    b2d = bias.astype(jnp.float32).reshape(1, E)

    # ---- lane-dense output: pad E to a multiple of 128; split E (parallel axis)
    #      rather than K when the resident weight would blow the VMEM budget. ----
    E_pad = _round_up(E, 128)
    if K * E_pad * in_bytes <= _WEIGHT_RESIDENT_LIMIT:
        tn = E_pad
    else:
        tn = max(128, min(E_pad, (_WEIGHT_RESIDENT_LIMIT // (K * in_bytes)) // 128 * 128))
        E_pad = _round_up(E_pad, tn)
    if E_pad != E:
        w2d = jnp.pad(w2d, ((0, 0), (0, E_pad - E)))
        b2d = jnp.pad(b2d, ((0, 0), (0, E_pad - E)))

    # ---- split-K only for unusually large K (zero-padded so reduction blocks are
    #      exact); typical patch-embedding K = C*ph*pw stays unsplit. ----
    if K > _K_SPLIT_THRESHOLD:
        tk = 2048
        K_pad = _round_up(K, tk)
        if K_pad != K:
            xp = jnp.pad(xp, ((0, 0), (0, K_pad - K)))
            w2d = jnp.pad(w2d, ((0, K_pad - K), (0, 0)))
    else:
        tk, K_pad = K, K
    nk = K_pad // tk

    # ---- M tiling: generation-aware default, no M padding (boundary blocks are
    #      handled; garbage rows never written back), >= 2 parallel tiles so both
    #      v7x TensorCores get work. ----
    vmem_cap = _vmem_capacity_bytes()
    if tile_m is None:
        tile_m = 2048 if vmem_cap >= (96 << 20) else 1024
    min_m_tiles = 4 if M >= 1024 else 2
    if M <= sublane:
        tm = M
    else:
        tm = max(sublane, min(tile_m, -(-M // min_m_tiles)))
        tm = _round_up(tm, sublane)
        if tm >= M:
            tm = M

    ge = E_pad // tn
    single_buf_w = (ge == 1 and nk == 1
                    and tk * tn * in_bytes > _SINGLE_BUFFER_WEIGHT_BYTES)
    buf_w = 1 if single_buf_w else 2
    use_acc_scratch = (nk > 1 and out_dtype != jnp.dtype(jnp.float32))

    def _vmem_need(tm_):
        return (2 * tm_ * tk * in_bytes            # x tile, double-buffered
                + buf_w * tk * tn * in_bytes       # weight tile
                + buf_w * 8 * tn * 4               # bias (sublane-padded, f32)
                + 2 * tm_ * tn * out_bytes         # output tile, double-buffered
                + (tm_ * tn * 4 if use_acc_scratch else 0))

    budget = max(24 << 20, vmem_cap - (16 << 20))
    while _vmem_need(tm) > budget and tm > sublane:
        new_tm = max(sublane, ((tm // 2) // sublane) * sublane)
        if new_tm == tm:
            break
        tm = new_tm

    gm = -(-M // tm)
    need = _vmem_need(tm)
    vmem_limit = int(min(max(2 * need, 32 << 20), budget))
    vmem_limit = int(max(vmem_limit, need + (2 << 20)))

    wb_kwargs = dict(pipeline_mode=pl.Buffered(1)) if single_buf_w else {}

    if nk == 1:
        kernel = _proj_kernel
        grid = (gm, ge)
        in_specs = [
            pl.BlockSpec((tm, K_pad), lambda i, j: (i, 0)),
            pl.BlockSpec((K_pad, tn), lambda i, j: (0, j), **wb_kwargs),
            pl.BlockSpec((1, tn), lambda i, j: (0, j), **wb_kwargs),
        ]
        out_specs = pl.BlockSpec((tm, tn), lambda i, j: (i, j))
        scratch_shapes = []
        dim_sem = ("parallel", "parallel")
    else:
        grid = (gm, ge, nk)  # reduction axis last
        in_specs = [
            pl.BlockSpec((tm, tk), lambda i, j, k: (i, k)),
            pl.BlockSpec((tk, tn), lambda i, j, k: (k, j)),
            pl.BlockSpec((1, tn), lambda i, j, k: (0, j)),
        ]
        out_specs = pl.BlockSpec((tm, tn), lambda i, j, k: (i, j))
        dim_sem = ("parallel", "parallel", "arbitrary")
        if use_acc_scratch:
            kernel = _proj_splitk_scratch_kernel
            scratch_shapes = [pltpu.VMEM((tm, tn), jnp.float32)]
        else:
            kernel = _proj_splitk_inplace_kernel
            scratch_shapes = []

    cost = pl.CostEstimate(
        flops=2 * M * K_pad * E_pad,
        transcendentals=0,
        bytes_accessed=(M * K_pad * in_bytes + K_pad * E_pad * in_bytes
                        + M * E_pad * out_bytes),
    )

    out = pl.pallas_call(
        kernel,
        out_shape=jax.ShapeDtypeStruct((M, E_pad), out_dtype),
        grid=grid,
        in_specs=in_specs,
        out_specs=out_specs,
        scratch_shapes=scratch_shapes,
        compiler_params=pltpu.CompilerParams(
            dimension_semantics=dim_sem,
            vmem_limit_bytes=vmem_limit,
        ),
        cost_estimate=cost,
    )(xp, w2d, b2d)

    # (B*nP, E_pad) -> (B, nP, E)   ==  conv(x).flatten(2).transpose(1, 2)
    return out[:, :E].reshape(B, nP, E)


if __name__ == "__main__":
    patch_size = (16, 8)

    def reference(x, weight, bias):
        B, C, H, W = x.shape
        E = weight.shape[0]
        hP, wP = H // patch_size[0], W // patch_size[1]
        out = jax.lax.conv_general_dilated(
            x, weight, window_strides=patch_size, padding="VALID",
            dimension_numbers=("NCHW", "OIHW", "NCHW"),
            precision=jax.lax.Precision.HIGHEST,
        ) + bias[None, :, None, None]
        return jnp.transpose(out.reshape(B, E, hP * wP), (0, 2, 1))

    key = jax.random.PRNGKey(0)
    kx, kw, kb = jax.random.split(key, 3)

    # Small shapes consistent with the module: patch_size=(16, 8), embed_dim=32.
    B, C, H, W, E = 2, 4, 32, 16, 32
    x = jax.random.normal(kx, (B, C, H, W), dtype=jnp.float32)
    weight = jax.random.normal(kw, (E, C, patch_size[0], patch_size[1]),
                               dtype=jnp.float32) * 0.02
    bias = jax.random.normal(kb, (E,), dtype=jnp.float32) * 0.02

    nP = (H // patch_size[0]) * (W // patch_size[1])
    ref = reference(x, weight, bias)

    # 1) Default config: bf16 operands, f32 accumulation, f32 output.
    fwd = jax.jit(functools.partial(patch_embedding, patch_size=patch_size))
    out = jax.block_until_ready(fwd(x, weight, bias))
    assert out.shape == (B, nP, E), out.shape
    err = float(jnp.max(jnp.abs(out - ref)))
    assert err < 3e-2, f"bf16-operand max abs error {err}"

    # 2) Strict f32-parity config (tight tolerance so layout bugs cannot hide).
    fwd32 = jax.jit(functools.partial(patch_embedding, patch_size=patch_size,
                                      use_bf16_operands=False))
    out32 = jax.block_until_ready(fwd32(x, weight, bias))
    err32 = float(jnp.max(jnp.abs(out32 - ref)))
    assert err32 < 1e-3, f"f32 max abs error {err32}"

    # 3) M = B*num_patches not a multiple of the M tile: exercises the no-pad
    #    boundary-block path (forced small tile) with multiple parallel M tiles.
    B2, C2, H2, W2, E2 = 3, 2, 32, 32, 32
    x2 = jax.random.normal(kx, (B2, C2, H2, W2), dtype=jnp.float32)
    w2 = jax.random.normal(kw, (E2, C2, patch_size[0], patch_size[1]),
                           dtype=jnp.float32) * 0.02
    b2 = jax.random.normal(kb, (E2,), dtype=jnp.float32) * 0.02
    out2 = jax.block_until_ready(
        jax.jit(functools.partial(patch_embedding, patch_size=patch_size,
                                  tile_m=16))(x2, w2, b2))
    ref2 = reference(x2, w2, b2)
    nP2 = (H2 // patch_size[0]) * (W2 // patch_size[1])
    assert out2.shape == (B2, nP2, E2), out2.shape
    err2 = float(jnp.max(jnp.abs(out2 - ref2)))
    assert err2 < 3e-2, f"boundary-tile max abs error {err2}"

    print("KERNEL_OK")
</pallas_src>

<mosaic_0001>
module attributes {stable_mosaic.version = 11 : i64} {
  func.func @_proj_kernel(%arg0: i32, %arg1: i32, %arg2: memref<8x512xbf16, #tpu.memory_space<vmem>>, %arg3: memref<512x128xbf16, #tpu.memory_space<vmem>>, %arg4: memref<1x128xf32, #tpu.memory_space<vmem>>, %arg5: memref<8x128xf32, #tpu.memory_space<vmem>>) attributes {dimension_semantics = [#tpu.dimension_semantics<parallel>, #tpu.dimension_semantics<parallel>], iteration_bounds = array<i64: 1, 1>, scalar_prefetch = 0 : i64, scratch_operands = 0 : i64, tpu.core_type = #tpu.core_type<tc>, window_params = [{transform_indices = @transform_0, window_bounds = array<i64: 8, 512>}, {transform_indices = @transform_1, window_bounds = array<i64: 512, 128>}, {transform_indices = @transform_2, window_bounds = array<i64: 1, 128>}, {transform_indices = @transform_3, window_bounds = array<i64: 8, 128>}]} {
    %c0 = arith.constant 0 : index
    %c0_0 = arith.constant 0 : index
    %0 = vector.load %arg2[%c0, %c0_0] : memref<8x512xbf16, #tpu.memory_space<vmem>>, vector<8x512xbf16>
    %c0_1 = arith.constant 0 : index
    %c0_2 = arith.constant 0 : index
    %1 = vector.load %arg3[%c0_1, %c0_2] : memref<512x128xbf16, #tpu.memory_space<vmem>>, vector<512x128xbf16>
    %cst = arith.constant dense<0.000000e+00> : vector<8x128xf32>
    %2 = tpu.matmul %0, %1, %cst {dimension_numbers = #tpu.dot_dimension_numbers<[1], [0], [0], [1], [0, 0, 1, 1], [], []>} : vector<8x512xbf16>, vector<512x128xbf16>, vector<8x128xf32> -> vector<8x128xf32>
    %c0_3 = arith.constant 0 : index
    %c0_4 = arith.constant 0 : index
    %3 = vector.load %arg4[%c0_3, %c0_4] : memref<1x128xf32, #tpu.memory_space<vmem>>, vector<1x128xf32>
    %4 = vector.broadcast %3 : vector<1x128xf32> to vector<8x128xf32>
    %5 = arith.addf %2, %4 : vector<8x128xf32>
    %c0_5 = arith.constant 0 : index
    %c0_6 = arith.constant 0 : index
    %6 = vector.load %arg5[%c0_5, %c0_6] : memref<8x128xf32, #tpu.memory_space<vmem>>, vector<8x128xf32>
    tpu.vector_store %arg5[%c0_5, %c0_6], %5 {strides = array<i32>} : memref<8x128xf32, #tpu.memory_space<vmem>>, vector<8x128xf32>,
    return
  }
  func.func @transform_0(%arg0: i32, %arg1: i32) -> (i32, i32) {
    %c0_i32 = arith.constant 0 : i32
    %c0_i32_0 = arith.constant 0 : i32
    return %arg0, %c0_i32 : i32, i32
  }
  func.func @transform_1(%arg0: i32, %arg1: i32) -> (i32, i32) {
    %c0_i32 = arith.constant 0 : i32
    %c0_i32_0 = arith.constant 0 : i32
    return %c0_i32, %arg1 : i32, i32
  }
  func.func @transform_2(%arg0: i32, %arg1: i32) -> (i32, i32) {
    %c0_i32 = arith.constant 0 : i32
    %c0_i32_0 = arith.constant 0 : i32
    return %c0_i32, %arg1 : i32, i32
  }
  func.func @transform_3(%arg0: i32, %arg1: i32) -> (i32, i32) {
    %c0_i32 = arith.constant 0 : i32
    return %arg0, %arg1 : i32, i32
  }
}

</mosaic_0001>

<bundles_post_ra>
// kernel: patch_embedding.1
= control target key start
LH: loop header
LB: loop body
LE: loop exit
PB: predicated region body
PF: predicated region fallthrough
CT: control target
= control target key end

     0   :  { %s670_s0 = inlined_call_operand.vmem [shape: bf16[8,512], index: 0, kind: input, shape index: {}]   ;;  %s671_s1 = inlined_call_operand.vmem [shape: bf16[512,128], index: 1, kind: input, shape index: {}]   ;;  %s672_s2 = inlined_call_operand.vmem [shape: f32[1,128], index: 2, kind: input, shape index: {}]   ;;  %s673_s3 = inlined_call_operand.hbm [shape: f32[8,128], index: 3, kind: output, shape index: {}]  }
   0x1   :  { %v472_v0 = vld [vmem:[%s671_s1 + $0x40] sm:$0xff]   ;;  %v476_v4 = vld [vmem:[%s671_s1 + $0x48] sm:$0xff]   ;;  %v480_v8 = vld [vmem:[%s671_s1 + $0x50] sm:$0xff]  }
   0x2   :  { %v473_v1 = vld [vmem:[%s671_s1 + $0xc0] sm:$0xff]   ;;  %427 = vmatprep.subr.bf16.mxu0 %v472_v0  ;;  %v477_v5 = vld [vmem:[%s671_s1 + $0xc8] sm:$0xff]   ;;  %v481_v9 = vld [vmem:[%s671_s1 + $0xd0] sm:$0xff]  }
   0x3   :  { %v474_v2 = vld [vmem:[%s671_s1] sm:$0xff]   ;;  %449 = vmatprep.subr.bf16.mxu1 %v473_v1  ;;  %v478_v6 = vld [vmem:[%s671_s1 + $0x8] sm:$0xff]   ;;  %v482_v10 = vld [vmem:[%s671_s1 + $0x10] sm:$0xff]  }
   0x4   :  { %v475_v3 = vld [vmem:[%s671_s1 + $0x80] sm:$0xff]   ;;  %428 = vmatpush3.bf16.msra.mxu0 %v474_v2  ;;  %v479_v7 = vld [vmem:[%s671_s1 + $0x88] sm:$0xff]   ;;  %v483_v11 = vld [vmem:[%s671_s1 + $0x90] sm:$0xff]  }
   0x5   :  { %450 = vmatpush3.bf16.msra.mxu1 %v475_v3  ;;  %429 = vmatprep.subr.bf16.mxu0 %v476_v4  ;;  %v484_v12 = vld [vmem:[%s671_s1 + $0x58] sm:$0xff]   ;;  %v488_v16 = vld [vmem:[%s671_s1 + $0x60] sm:$0xff]   ;;  %v492_v20 = vld [vmem:[%s671_s1 + $0x68] sm:$0xff]  }
   0x6   :  { %451 = vmatprep.subr.bf16.mxu1 %v477_v5  ;;  %v485_v13 = vld [vmem:[%s671_s1 + $0xd8] sm:$0xff]   ;;  %v489_v17 = vld [vmem:[%s671_s1 + $0xe0] sm:$0xff]   ;;  %v493_v21 = vld [vmem:[%s671_s1 + $0xe8] sm:$0xff]  }
   0x7   :  { %v486_v14 = vld [vmem:[%s671_s1 + $0x18] sm:$0xff]   ;;  %v490_v18 = vld [vmem:[%s671_s1 + $0x20] sm:$0xff]   ;;  %v494_v22 = vld [vmem:[%s671_s1 + $0x28] sm:$0xff]  }
   0x8   :  { %430 = vmatpush3.bf16.msra.mxu0 %v478_v6  ;;  %v487_v15 = vld [vmem:[%s671_s1 + $0x98] sm:$0xff]   ;;  %v491_v19 = vld [vmem:[%s671_s1 + $0xa0] sm:$0xff]   ;;  %v495_v23 = vld [vmem:[%s671_s1 + $0xa8] sm:$0xff]  }
   0x9   :  { %452 = vmatpush3.bf16.msra.mxu1 %v479_v7  ;;  %431 = vmatprep.subr.bf16.mxu0 %v480_v8  ;;  %v496_v24 = vld [vmem:[%s671_s1 + $0x70] sm:$0xff]   ;;  %v500_v28 = vld [vmem:[%s671_s1 + $0x78] sm:$0xff]   ;;  %v16_v32 = vld [vmem:[%s670_s0] sm:$0xff] }
   0xa   :  { %453 = vmatprep.subr.bf16.mxu1 %v481_v9  ;;  %v497_v25 = vld [vmem:[%s671_s1 + $0xf0] sm:$0xff]   ;;  %v501_v29 = vld [vmem:[%s671_s1 + $0xf8] sm:$0xff]   ;;  %v17_v33 = vld [vmem:[%s670_s0 + $0x8] sm:$0xff] }
   0xb   :  { %v498_v26 = vld [vmem:[%s671_s1 + $0x30] sm:$0xff]   ;;  %v502_v30 = vld [vmem:[%s671_s1 + $0x38] sm:$0xff]  }
   0xc   :  { %432 = vmatpush3.bf16.msra.mxu0 %v482_v10  ;;  %v499_v27 = vld [vmem:[%s671_s1 + $0xb0] sm:$0xff]   ;;  %v503_v31 = vld [vmem:[%s671_s1 + $0xb8] sm:$0xff]  }
   0xd   :  { %454 = vmatpush3.bf16.msra.mxu1 %v483_v11  ;;  %433 = vmatprep.subr.bf16.mxu0 %v484_v12 }
   0xe   :  { %455 = vmatprep.subr.bf16.mxu1 %v485_v13 }
  0x10   :  { %434 = vmatpush3.bf16.msra.mxu0 %v486_v14 }
  0x11   :  { %456 = vmatpush3.bf16.msra.mxu1 %v487_v15  ;;  %435 = vmatprep.subr.bf16.mxu0 %v488_v16 }
  0x12   :  { %457 = vmatprep.subr.bf16.mxu1 %v489_v17 }
  0x14   :  { %436 = vmatpush3.bf16.msra.mxu0 %v490_v18 }
  0x15   :  { %458 = vmatpush3.bf16.msra.mxu1 %v491_v19  ;;  %437 = vmatprep.subr.bf16.mxu0 %v492_v20 }
  0x16   :  { %459 = vmatprep.subr.bf16.mxu1 %v493_v21 }
  0x18   :  { %438 = vmatpush3.bf16.msra.mxu0 %v494_v22 }
  0x19   :  { %460 = vmatpush3.bf16.msra.mxu1 %v495_v23  ;;  %439 = vmatprep.subr.bf16.mxu0 %v496_v24 }
  0x1a   :  { %461 = vmatprep.subr.bf16.mxu1 %v497_v25 }
  0x1c   :  { %440 = vmatpush3.bf16.msra.mxu0 %v498_v26 }
  0x1d   :  { %462 = vmatpush3.bf16.msra.mxu1 %v499_v27  ;;  %441 = vmatprep.subr.bf16.mxu0 %v500_v28 }
  0x1e   :  { %463 = vmatprep.subr.bf16.mxu1 %v501_v29 }
  0x20   :  { %442 = vmatpush3.bf16.msra.mxu0 %v502_v30 }
  0x21   :  { %8 = vsyncpa [#allocation3], 0  ;;  %464 = vmatpush3.bf16.msra.mxu1 %v503_v31  ;;  %v391_v34 = vcombine.low %v16_v32, %v16_v32  ;;  %v392_v35 = vcombine.high %v16_v32, %v16_v32  ;;  %v393_v36 = vcombine.low %v17_v33, %v17_v33  ;;  %v394_v37 = vcombine.high %v17_v33, %v17_v33  ;;  %v390_v40 = vld [vmem:[%s672_s2] ss:$0 sm:$0xff]  ;;  %s532_s0 = smov [#allocation2]  }
  0x22   :  { %s382_s27 = sshll.u32 %s532_s0, 4  ;;  %s383_s27 = int_to_ptr.vmem [resolvable:$true] %s382_s27 }
  0x23   :  { %327 = vmatprep.mubr.bf16.mxu0 %v392_v35  ;;  %367 = vmatprep.mubr.bf16.mxu1 %v394_v37  ;;  %s508_s28 = scalar_lea.vmem %s383_s27, 128  ;;  %p513_p1 = scmp.lt.s32.totalorder %s383_s27, %s383_s27 }
  0x24   :  { %328 = vmatmul.mubr.bf16.vlgmr.msra.gmra.mrb[0].mxu0 %v391_v34  ;;  %368 = vmatmul.mubr.bf16.vlgmr.msra.gmra.mrb[0].mxu1 %v393_v36  ;;  %p509_p0 = scmp.ne.s32.totalorder %s383_s27, %s508_s28  ;;  %p514_p2 = scmp.lt.s32.totalorder %s508_s28, %s508_s28 }
  0x26   :  { %p515_p3 = por %p514_p2, %p513_p1 }
  0x28   :  { %p516_p4 = pnand %p515_p3, %p509_p0 }
  0xf7   :  { %v443_v38 = vpop.f32.mrb[0].mxu0  ;;  %v465_v39 = vpop.f32.mrb[0].mxu1 }
  0xf8   :  { %v444_v41 = vpop.f32.mrb[1].mxu0  ;;  %v466_v42 = vpop.f32.mrb[1].mxu1 }
  0xf9   :  { %v445_v43 = vadd.f32 %v444_v41, %v443_v38  ;;  %v467_v44 = vadd.f32 %v466_v42, %v465_v39  ;;  %v446_v45 = vpop.f32.mrb[2].mxu0  ;;  %v468_v46 = vpop.f32.mrb[2].mxu1 }
  0xfa   :  { %v447_v47 = vpop.f32.mrb[3].mxu0  ;;  %v469_v48 = vpop.f32.mrb[3].mxu1 }
  0xfb   :  { %v330_v49 = vadd.f32 %v445_v43, %v390_v40 }
  0xfd   :  { %v370_v50 = vadd.f32 %v467_v44, %v330_v49 }
  0xff   :  { %375 = vst [vmem:[#allocation2] sm:$0xff] %v370_v50 }
 0x100   :  { %519 = shalt.err (!%p516_p4)
}
 0x101   :  { %s520_s30 = scalar_lea.hbm %s673_s3, 128 }
 0x102   :  { %p521_p5 = scmp.ne.s32.totalorder %s673_s3, %s520_s30  ;;  %p524_p6 = scmp.lt.u32.totalorder %s520_s30, %s673_s3 }
 0x104   :  { %p526_p7 = pnand %p524_p6, %p521_p5 }
 0x106   :  { %529 = shalt.err (!%p526_p7)
}
 0x107   :  { %385 = dma.vmem_to_hbm [thread:$0]  %s383_s27, 128, %s673_s3, [#allocation3]  }
 0x108   :  { %530 = dma.done.wait [#allocation3], 128  }
 0x109   :  { %531 = vsyncadd [#allocation3], 4294967168 }
 0x10a   :  { %389 = vsyncpa [#allocation3], 1 }

</bundles_post_ra>
